<compile_context>
chip_gen: v7x
topology: tpu7x:2x2x1
jax: 0.10.0
libtpu: 0.0.40
codegen_flags: <defaults>
</compile_context>

<pallas_src>
import functools
import math

import jax
import jax.numpy as jnp
from jax import lax
from jax.experimental import pallas as pl
from jax.experimental.pallas import tpu as pltpu


def _round_up(x, m):
    return (x + m - 1) // m * m


# --------------------------------------------------------------------------- #
# Kernel
# --------------------------------------------------------------------------- #
def _attention_kernel(query_ref, ref_ref, wq_ref, bq_ref, wc_ref, bc_ref, v_ref,
                      e_ref, logits_ref, *, use_tanh, C):
    tb, tl, d = ref_ref.shape                       # (TB, TL, D) ref tile

    # ---- project_query: q_cols[:, b] = Wq @ query[b] + bq ------------------
    # Recomputed every grid step (trivial (D,D)x(D,TB) dot) so there is no
    # cross-step state and both grid axes can be scheduled "parallel".
    q_cols = lax.dot_general(
        wq_ref[...], query_ref[...], (((1,), (1,)), ((), ())),
        preferred_element_type=jnp.float32) + bq_ref[...]          # (D, TB)

    # ---- project_ref (Conv1d k=1) as ONE batched MXU dot for the whole tile --
    # (TB, TL, D) -> (TB*TL, D) merges leading dims only (TL % 8 == 0), which is
    # a physical-layout no-op.  Contraction on both minor dims (Wc @ X^T) is the
    # natural transposed-RHS MXU pattern -> no big XLU transpose.
    x2d = ref_ref[...].reshape(tb * tl, d)
    e_all = lax.dot_general(
        wc_ref[...], x2d, (((1,), (1,)), ((), ())),
        preferred_element_type=jnp.float32) + bc_ref[...]          # (D, TB*TL)

    v_col = v_ref[...]                                             # (D, 1)
    row_ids = lax.broadcasted_iota(jnp.int32, (tb, 1), 0)

    # Per-batch-row loop is elementwise-only on 128-aligned lane slices of the
    # single dot result.  Logits rows are accumulated into one (TB, TL) value
    # so the output gets a single unmasked store per grid step.
    u = jnp.zeros((tb, tl), jnp.float32)
    for b in range(tb):
        e_b = e_all[:, b * tl:(b + 1) * tl]                        # (D, TL) lane slice
        e_ref[b] = e_b.astype(e_ref.dtype)                         # aligned (D, TL) slab store
        t_b = jnp.tanh(q_cols[:, b:b + 1] + e_b)                   # EUP, lane-dense in L
        u_b = jnp.sum(t_b * v_col, axis=0, keepdims=True)          # (1, TL) sublane reduce
        u = u + jnp.where(row_ids == b, u_b, 0.0)                  # place row b

    logits = C * jnp.tanh(u) if use_tanh else u
    logits_ref[...] = logits.astype(logits_ref.dtype)              # single full-tile store


# --------------------------------------------------------------------------- #
# VMEM budgeting (lane-padding aware) and tile selection
# --------------------------------------------------------------------------- #
def _vmem_bytes(tb, tl, D, e_bytes=4):
    """Estimated VMEM footprint: double-buffered blocks + compiler temporaries."""
    lane_d = _round_up(D, 128)          # minor dim padded to 128 lanes
    sub_d = _round_up(D, 8)             # sublane padding
    sub_tb = _round_up(tb, 8)
    ref_blk = tb * tl * lane_d * 4      # (TB, TL, D): D lane-padded (4x for D=32)
    e_blk = tb * sub_d * tl * e_bytes   # (TB, D, TL): lane-dense in L
    q_blk = sub_tb * lane_d * 4
    lg_blk = sub_tb * tl * 4
    w_blk = 2 * sub_d * lane_d * 4 + 3 * sub_d * 128 * 4          # Wq, Wc, bq, bc, v
    blocks = 2 * (ref_blk + e_blk + q_blk + lg_blk + w_blk)       # double-buffered
    interm = tb * sub_d * tl * 4 + 2 * sub_d * tl * 4             # e_all + loop temps
    return blocks + interm


def _pick_tiles(B, L, D, tb, tl, e_bytes, budget=32 * 1024 * 1024, max_tl=8192):
    if tb is None:
        tb = 8 if (B % 8 == 0 or B > 8) else B      # 8 (pad B up) or full small B
    assert tb % 8 == 0 or tb >= B, "tb must be a multiple of 8 or cover all of B"
    if tl is None:
        t = min(_round_up(L, 128), max_tl)
        while t > 128 and _vmem_bytes(tb, t, D, e_bytes) > budget:
            t -= 128
        tl = max(t, 128)
    assert tl % 128 == 0, "tl must be a multiple of 128"
    return tb, tl


# --------------------------------------------------------------------------- #
# Wrapper
# --------------------------------------------------------------------------- #
def attention_forward(query, ref, params, *, use_tanh=False, C=10.0,
                      tb=None, tl=None, e_dtype=jnp.float32):
    """query: (B, D); ref: (B, L, D). Returns (e: (B, D, L), logits: (B, L)).

    e_dtype=jnp.bfloat16 is an opt-in traffic optimization (e writeback is ~half
    of HBM traffic); all in-kernel math stays float32.
    """
    B, D = query.shape
    Br, L, Dr = ref.shape
    assert Br == B and Dr == D

    e_bytes = jnp.dtype(e_dtype).itemsize
    tb, tl = _pick_tiles(B, L, D, tb, tl, e_bytes)

    # Pad B/L to tile multiples (zeros) so every block is (8,128)-aligned; this
    # replaces the old "tl = L" fallback that could blow the VMEM budget.
    Bp, Lp = _round_up(B, tb), _round_up(L, tl)
    if Bp != B or Lp != L:
        query = jnp.pad(query, ((0, Bp - B), (0, 0)))
        ref = jnp.pad(ref, ((0, Bp - B), (0, Lp - L), (0, 0)))
    nb, nl = Bp // tb, Lp // tl

    # Weights passed untransposed: the kernel contracts on their last (input) dim.
    wq = params["wq"]                      # (D, D) Linear weight (out, in)
    bq = params["bq"].reshape(D, 1)
    wc = params["wc"][:, :, 0]             # (D, D) Conv1d k=1 weight (out, in)
    bc = params["bc"].reshape(D, 1)
    v = params["v"].reshape(D, 1)

    kernel = functools.partial(_attention_kernel, use_tanh=use_tanh, C=float(C))

    vmem_limit = int(_vmem_bytes(tb, tl, D, e_bytes) + (8 << 20))
    vmem_limit = max(16 << 20, min(vmem_limit, 56 << 20))

    grid_spec = pltpu.PrefetchScalarGridSpec(
        num_scalar_prefetch=0,
        grid=(nb, nl),
        in_specs=[
            pl.BlockSpec((tb, D), lambda bi, li: (bi, 0)),          # query (reused over L)
            pl.BlockSpec((tb, tl, D), lambda bi, li: (bi, li, 0)),  # ref tile
            pl.BlockSpec((D, D), lambda bi, li: (0, 0)),            # Wq (VMEM resident)
            pl.BlockSpec((D, 1), lambda bi, li: (0, 0)),            # bq
            pl.BlockSpec((D, D), lambda bi, li: (0, 0)),            # Wc
            pl.BlockSpec((D, 1), lambda bi, li: (0, 0)),            # bc
            pl.BlockSpec((D, 1), lambda bi, li: (0, 0)),            # v
        ],
        out_specs=(
            pl.BlockSpec((tb, D, tl), lambda bi, li: (bi, 0, li)),  # e  (B, D, L), L lane-dense
            pl.BlockSpec((tb, tl), lambda bi, li: (bi, li)),        # logits (B, L)
        ),
    )

    e, logits = pl.pallas_call(
        kernel,
        out_shape=(jax.ShapeDtypeStruct((Bp, D, Lp), e_dtype),
                   jax.ShapeDtypeStruct((Bp, Lp), jnp.float32)),
        grid_spec=grid_spec,
        compiler_params=pltpu.CompilerParams(
            dimension_semantics=("parallel", "parallel"),   # no cross-step state -> both
            vmem_limit_bytes=vmem_limit),                   # axes shardable across TCs
    )(query, ref, wq, bq, wc, bc, v)

    if Bp != B or Lp != L:
        e = e[:B, :, :L]
        logits = logits[:B, :L]
    return e, logits


# --------------------------------------------------------------------------- #
# Reference + demo
# --------------------------------------------------------------------------- #
def init_params(key, dim, directions=2):
    """Deterministic init mirroring PyTorch default inits (uniform ranges)."""
    D = directions * dim
    k_wq, k_bq, k_wc, k_bc, k_v = jax.random.split(key, 5)
    lin_bound = 1.0 / math.sqrt(D)
    v_bound = 1.0 / math.sqrt(dim)
    return {
        "wq": jax.random.uniform(k_wq, (D, D), jnp.float32, -lin_bound, lin_bound),
        "bq": jax.random.uniform(k_bq, (D,), jnp.float32, -lin_bound, lin_bound),
        "wc": jax.random.uniform(k_wc, (D, D, 1), jnp.float32, -lin_bound, lin_bound),
        "bc": jax.random.uniform(k_bc, (D,), jnp.float32, -lin_bound, lin_bound),
        "v": jax.random.uniform(k_v, (2 * dim,), jnp.float32, -v_bound, v_bound),
    }


def _reference_forward(query, ref, params, *, use_tanh=False, C=10.0):
    """Pure-JAX reference mirroring the PyTorch code line by line."""
    q = query @ params["wq"].T + params["bq"]                              # (B, D)
    wc = params["wc"][:, :, 0]                                             # (D_out, D_in)
    e = jnp.einsum("oi,bli->bol", wc, ref) + params["bc"][None, :, None]   # (B, D, L)
    t = jnp.tanh(q[:, :, None] + e)                                        # (B, D, L)
    u = jnp.sum(params["v"][None, :, None] * t, axis=1)                    # (B, L), f32 reduce
    logits = C * jnp.tanh(u) if use_tanh else u
    return e, logits


def _bf16_representable(x):
    # Test inputs are rounded to bf16-representable f32 values so the MXU result
    # is exact regardless of the default matmul pass count -> tight tolerances.
    return x.astype(jnp.bfloat16).astype(jnp.float32)


if __name__ == "__main__":
    dim, directions = 16, 2
    D = directions * dim          # 32

    key = jax.random.PRNGKey(0)
    k_params, k_q1, k_r1, k_q2, k_r2 = jax.random.split(key, 5)
    params = jax.tree_util.tree_map(_bf16_representable,
                                    init_params(k_params, dim, directions))

    # --- small shapes implied by the module (single grid step, padded L path) ---
    B, L = 2, 8
    query = _bf16_representable(jax.random.normal(k_q1, (B, D), jnp.float32))
    ref = _bf16_representable(jax.random.normal(k_r1, (B, L, D), jnp.float32))

    e, logits = attention_forward(query, ref, params, use_tanh=False, C=10.0)
    jax.block_until_ready((e, logits))
    e_r, logits_r = _reference_forward(query, ref, params, use_tanh=False, C=10.0)
    assert e.shape == (B, D, L) and logits.shape == (B, L)
    assert jnp.allclose(e, e_r, atol=1e-4, rtol=1e-4)
    assert jnp.allclose(logits, logits_r, atol=1e-4, rtol=1e-4)

    # --- multi-tile case: 2x2 grid, multiple batch tiles, use_tanh path ---
    B2, L2 = 16, 256
    query2 = _bf16_representable(jax.random.normal(k_q2, (B2, D), jnp.float32))
    ref2 = _bf16_representable(jax.random.normal(k_r2, (B2, L2, D), jnp.float32))
    e2, logits2 = attention_forward(query2, ref2, params, use_tanh=True, C=10.0,
                                    tb=8, tl=128)
    jax.block_until_ready((e2, logits2))
    e2_r, logits2_r = _reference_forward(query2, ref2, params, use_tanh=True, C=10.0)
    assert e2.shape == (B2, D, L2) and logits2.shape == (B2, L2)
    assert jnp.allclose(e2, e2_r, atol=1e-4, rtol=1e-4)
    assert jnp.allclose(logits2, logits2_r, atol=1e-4, rtol=1e-4)

    print("KERNEL_OK")
</pallas_src>

<mosaic_0001>
module attributes {stable_mosaic.version = 11 : i64} {
  func.func @_attention_kernel(%arg0: i32, %arg1: i32, %arg2: memref<2x32xf32, #tpu.memory_space<vmem>>, %arg3: memref<2x128x32xf32, #tpu.memory_space<vmem>>, %arg4: memref<32x32xf32, #tpu.memory_space<vmem>>, %arg5: memref<32x1xf32, #tpu.memory_space<vmem>>, %arg6: memref<32x32xf32, #tpu.memory_space<vmem>>, %arg7: memref<32x1xf32, #tpu.memory_space<vmem>>, %arg8: memref<32x1xf32, #tpu.memory_space<vmem>>, %arg9: memref<2x32x128xf32, #tpu.memory_space<vmem>>, %arg10: memref<2x128xf32, #tpu.memory_space<vmem>>) attributes {dimension_semantics = [#tpu.dimension_semantics<parallel>, #tpu.dimension_semantics<parallel>], iteration_bounds = array<i64: 1, 1>, scalar_prefetch = 0 : i64, scratch_operands = 0 : i64, tpu.core_type = #tpu.core_type<tc>, window_params = [{transform_indices = @transform_0, window_bounds = array<i64: 2, 32>}, {transform_indices = @transform_1, window_bounds = array<i64: 2, 128, 32>}, {pipeline_mode = #tpu.pipeline_mode<synchronous>, transform_indices = @transform_2, window_bounds = array<i64: 32, 32>}, {pipeline_mode = #tpu.pipeline_mode<synchronous>, transform_indices = @transform_3, window_bounds = array<i64: 32, 1>}, {pipeline_mode = #tpu.pipeline_mode<synchronous>, transform_indices = @transform_4, window_bounds = array<i64: 32, 32>}, {pipeline_mode = #tpu.pipeline_mode<synchronous>, transform_indices = @transform_5, window_bounds = array<i64: 32, 1>}, {pipeline_mode = #tpu.pipeline_mode<synchronous>, transform_indices = @transform_6, window_bounds = array<i64: 32, 1>}, {transform_indices = @transform_7, window_bounds = array<i64: 2, 32, 128>}, {transform_indices = @transform_8, window_bounds = array<i64: 2, 128>}]} {
    %c0 = arith.constant 0 : index
    %c0_0 = arith.constant 0 : index
    %0 = vector.load %arg4[%c0, %c0_0] : memref<32x32xf32, #tpu.memory_space<vmem>>, vector<32x32xf32>
    %c0_1 = arith.constant 0 : index
    %c0_2 = arith.constant 0 : index
    %1 = vector.load %arg2[%c0_1, %c0_2] : memref<2x32xf32, #tpu.memory_space<vmem>>, vector<2x32xf32>
    %cst = arith.constant dense<0.000000e+00> : vector<32x2xf32>
    %2 = tpu.matmul %0, %1, %cst {dimension_numbers = #tpu.dot_dimension_numbers<[1], [1], [0], [0], [0, 0, 1, 0], [], []>} : vector<32x32xf32>, vector<2x32xf32>, vector<32x2xf32> -> vector<32x2xf32>
    %c0_3 = arith.constant 0 : index
    %c0_4 = arith.constant 0 : index
    %3 = vector.load %arg5[%c0_3, %c0_4] : memref<32x1xf32, #tpu.memory_space<vmem>>, vector<32x1xf32>
    %4 = vector.broadcast %3 : vector<32x1xf32> to vector<32x2xf32>
    %5 = arith.addf %2, %4 : vector<32x2xf32>
    %c0_5 = arith.constant 0 : index
    %c0_6 = arith.constant 0 : index
    %c0_7 = arith.constant 0 : index
    %6 = vector.load %arg3[%c0_5, %c0_6, %c0_7] : memref<2x128x32xf32, #tpu.memory_space<vmem>>, vector<2x128x32xf32>
    %7 = vector.shape_cast %6 : vector<2x128x32xf32> to vector<256x32xf32>
    %c0_8 = arith.constant 0 : index
    %c0_9 = arith.constant 0 : index
    %8 = vector.load %arg6[%c0_8, %c0_9] : memref<32x32xf32, #tpu.memory_space<vmem>>, vector<32x32xf32>
    %cst_10 = arith.constant dense<0.000000e+00> : vector<32x256xf32>
    %9 = tpu.matmul %8, %7, %cst_10 {dimension_numbers = #tpu.dot_dimension_numbers<[1], [1], [0], [0], [0, 0, 1, 0], [], []>} : vector<32x32xf32>, vector<256x32xf32>, vector<32x256xf32> -> vector<32x256xf32>
    %c0_11 = arith.constant 0 : index
    %c0_12 = arith.constant 0 : index
    %10 = vector.load %arg7[%c0_11, %c0_12] : memref<32x1xf32, #tpu.memory_space<vmem>>, vector<32x1xf32>
    %11 = vector.broadcast %10 : vector<32x1xf32> to vector<32x256xf32>
    %12 = arith.addf %9, %11 : vector<32x256xf32>
    %c0_13 = arith.constant 0 : index
    %c0_14 = arith.constant 0 : index
    %13 = vector.load %arg8[%c0_13, %c0_14] : memref<32x1xf32, #tpu.memory_space<vmem>>, vector<32x1xf32>
    %14 = tpu.iota {dimensions = array<i32: 0>} : vector<2x1xi32>
    %cst_15 = arith.constant 0.000000e+00 : f32
    %15 = vector.broadcast %cst_15 : f32 to vector<2x128xf32>
    %16 = vector.extract_strided_slice %12 {offsets = [0, 0], sizes = [32, 128], strides = [1, 1]} : vector<32x256xf32> to vector<32x128xf32>
    %c0_16 = arith.constant 0 : index
    %c0_17 = arith.constant 0 : index
    %c0_18 = arith.constant 0 : index
    %17 = vector.load %arg9[%c0_16, %c0_17, %c0_18] : memref<2x32x128xf32, #tpu.memory_space<vmem>>, vector<1x32x128xf32>
    %18 = vector.shape_cast %17 : vector<1x32x128xf32> to vector<32x128xf32>
    %19 = vector.shape_cast %16 : vector<32x128xf32> to vector<1x32x128xf32>
    tpu.vector_store %arg9[%c0_16, %c0_17, %c0_18], %19 {strides = array<i32>} : memref<2x32x128xf32, #tpu.memory_space<vmem>>, vector<1x32x128xf32>,
    %20 = vector.extract_strided_slice %5 {offsets = [0, 0], sizes = [32, 1], strides = [1, 1]} : vector<32x2xf32> to vector<32x1xf32>
    %21 = vector.broadcast %20 : vector<32x1xf32> to vector<32x128xf32>
    %22 = arith.addf %21, %16 : vector<32x128xf32>
    %23 = math.tanh %22 : vector<32x128xf32>
    %24 = vector.broadcast %13 : vector<32x1xf32> to vector<32x128xf32>
    %25 = arith.mulf %23, %24 : vector<32x128xf32>
    %cst_19 = arith.constant dense<0.000000e+00> : vector<128xf32>
    %26 = vector.multi_reduction <add>, %25, %cst_19 [0] : vector<32x128xf32> to vector<128xf32>
    %27 = vector.shape_cast %26 : vector<128xf32> to vector<1x128xf32>
    %c0_i32 = arith.constant 0 : i32
    %28 = vector.broadcast %c0_i32 : i32 to vector<2x1xi32>
    %29 = arith.cmpi eq, %14, %28 : vector<2x1xi32>
    %cst_20 = arith.constant 0.000000e+00 : f32
    %30 = vector.shape_cast %29 : vector<2x1xi1> to vector<2x1xi1>
    %31 = vector.broadcast %30 : vector<2x1xi1> to vector<2x128xi1>
    %32 = vector.shape_cast %27 : vector<1x128xf32> to vector<1x128xf32>
    %33 = vector.broadcast %32 : vector<1x128xf32> to vector<2x128xf32>
    %34 = vector.broadcast %cst_20 : f32 to vector<2x128xf32>
    %35 = arith.select %31, %33, %34 : vector<2x128xi1>, vector<2x128xf32>
    %36 = arith.addf %15, %35 : vector<2x128xf32>
    %37 = vector.extract_strided_slice %12 {offsets = [0, 128], sizes = [32, 128], strides = [1, 1]} : vector<32x256xf32> to vector<32x128xf32>
    %c1 = arith.constant 1 : index
    %c0_21 = arith.constant 0 : index
    %c0_22 = arith.constant 0 : index
    %38 = vector.load %arg9[%c1, %c0_21, %c0_22] : memref<2x32x128xf32, #tpu.memory_space<vmem>>, vector<1x32x128xf32>
    %39 = vector.shape_cast %38 : vector<1x32x128xf32> to vector<32x128xf32>
    %40 = vector.shape_cast %37 : vector<32x128xf32> to vector<1x32x128xf32>
    tpu.vector_store %arg9[%c1, %c0_21, %c0_22], %40 {strides = array<i32>} : memref<2x32x128xf32, #tpu.memory_space<vmem>>, vector<1x32x128xf32>,
    %41 = vector.extract_strided_slice %5 {offsets = [0, 1], sizes = [32, 1], strides = [1, 1]} : vector<32x2xf32> to vector<32x1xf32>
    %42 = vector.broadcast %41 : vector<32x1xf32> to vector<32x128xf32>
    %43 = arith.addf %42, %37 : vector<32x128xf32>
    %44 = math.tanh %43 : vector<32x128xf32>
    %45 = vector.broadcast %13 : vector<32x1xf32> to vector<32x128xf32>
    %46 = arith.mulf %44, %45 : vector<32x128xf32>
    %cst_23 = arith.constant dense<0.000000e+00> : vector<128xf32>
    %47 = vector.multi_reduction <add>, %46, %cst_23 [0] : vector<32x128xf32> to vector<128xf32>
    %48 = vector.shape_cast %47 : vector<128xf32> to vector<1x128xf32>
    %c1_i32 = arith.constant 1 : i32
    %49 = vector.broadcast %c1_i32 : i32 to vector<2x1xi32>
    %50 = arith.cmpi eq, %14, %49 : vector<2x1xi32>
    %cst_24 = arith.constant 0.000000e+00 : f32
    %51 = vector.shape_cast %50 : vector<2x1xi1> to vector<2x1xi1>
    %52 = vector.broadcast %51 : vector<2x1xi1> to vector<2x128xi1>
    %53 = vector.shape_cast %48 : vector<1x128xf32> to vector<1x128xf32>
    %54 = vector.broadcast %53 : vector<1x128xf32> to vector<2x128xf32>
    %55 = vector.broadcast %cst_24 : f32 to vector<2x128xf32>
    %56 = arith.select %52, %54, %55 : vector<2x128xi1>, vector<2x128xf32>
    %57 = arith.addf %36, %56 : vector<2x128xf32>
    %c0_25 = arith.constant 0 : index
    %c0_26 = arith.constant 0 : index
    %58 = vector.load %arg10[%c0_25, %c0_26] : memref<2x128xf32, #tpu.memory_space<vmem>>, vector<2x128xf32>
    tpu.vector_store %arg10[%c0_25, %c0_26], %57 {strides = array<i32>} : memref<2x128xf32, #tpu.memory_space<vmem>>, vector<2x128xf32>,
    return
  }
  func.func @transform_0(%arg0: i32, %arg1: i32) -> (i32, i32) {
    %c0_i32 = arith.constant 0 : i32
    %c0_i32_0 = arith.constant 0 : i32
    return %arg0, %c0_i32 : i32, i32
  }
  func.func @transform_1(%arg0: i32, %arg1: i32) -> (i32, i32, i32) {
    %c0_i32 = arith.constant 0 : i32
    %c0_i32_0 = arith.constant 0 : i32
    return %arg0, %arg1, %c0_i32 : i32, i32, i32
  }
  func.func @transform_2(%arg0: i32, %arg1: i32) -> (i32, i32) {
    %c0_i32 = arith.constant 0 : i32
    %c0_i32_0 = arith.constant 0 : i32
    %c0_i32_1 = arith.constant 0 : i32
    return %c0_i32, %c0_i32_0 : i32, i32
  }
  func.func @transform_3(%arg0: i32, %arg1: i32) -> (i32, i32) {
    %c0_i32 = arith.constant 0 : i32
    %c0_i32_0 = arith.constant 0 : i32
    %c0_i32_1 = arith.constant 0 : i32
    return %c0_i32, %c0_i32_0 : i32, i32
  }
  func.func @transform_4(%arg0: i32, %arg1: i32) -> (i32, i32) {
    %c0_i32 = arith.constant 0 : i32
    %c0_i32_0 = arith.constant 0 : i32
    %c0_i32_1 = arith.constant 0 : i32
    return %c0_i32, %c0_i32_0 : i32, i32
  }
  func.func @transform_5(%arg0: i32, %arg1: i32) -> (i32, i32) {
    %c0_i32 = arith.constant 0 : i32
    %c0_i32_0 = arith.constant 0 : i32
    %c0_i32_1 = arith.constant 0 : i32
    return %c0_i32, %c0_i32_0 : i32, i32
  }
  func.func @transform_6(%arg0: i32, %arg1: i32) -> (i32, i32) {
    %c0_i32 = arith.constant 0 : i32
    %c0_i32_0 = arith.constant 0 : i32
    %c0_i32_1 = arith.constant 0 : i32
    return %c0_i32, %c0_i32_0 : i32, i32
  }
  func.func @transform_7(%arg0: i32, %arg1: i32) -> (i32, i32, i32) {
    %c0_i32 = arith.constant 0 : i32
    %c0_i32_0 = arith.constant 0 : i32
    return %arg0, %c0_i32, %arg1 : i32, i32, i32
  }
  func.func @transform_8(%arg0: i32, %arg1: i32) -> (i32, i32) {
    %c0_i32 = arith.constant 0 : i32
    return %arg0, %arg1 : i32, i32
  }
}

</mosaic_0001>

<bundles_post_ra>
// kernel: tpu_custom_call.1
= control target key start
LH: loop header
LB: loop body
LE: loop exit
PB: predicated region body
PF: predicated region fallthrough
CT: control target
= control target key end

     0   :  { %14 = vsyncpa [#allocation3], 0  ;;  %vm59_vm0 = vcmask 261120   ;;  %v806_v7 = vmov 0   ;;  %s1136_s0 = inlined_call_operand.vmem [shape: f32[2,32], index: 0, kind: input, shape index: {}]   ;;  %s1137_s1 = inlined_call_operand.vmem [shape: f32[2,128,32], index: 1, kind: input, shape index: {}]   ;;  %s1138_s2 = inlined_call_operand.vmem [shape: f32[32,32], index: 2, kind: input, shape index: {}]   ;;  %s1139_s3 = inlined_call_operand.vmem [shape: f32[32,1], index: 3, kind: input, shape index: {}]   ;;  %s1140_s4 = inlined_call_operand.vmem [shape: f32[32,32], index: 4, kind: input, shape index: {}]   ;;  %s1141_s5 = inlined_call_operand.vmem [shape: f32[32,1], index: 5, kind: input, shape index: {}]   ;;  %s1142_s6 = inlined_call_operand.vmem [shape: f32[32,1], index: 6, kind: input, shape index: {}]   ;;  %s1143_s7 = inlined_call_operand.hbm [shape: f32[2,32,128], index: 7, kind: output, shape index: {0}]   ;;  %s1144_s8 = inlined_call_operand.hbm [shape: f32[2,128], index: 8, kind: output, shape index: {1}]  }
   0x1   :  { %v34_v0 = vld [vmem:[%s1136_s0] sm:$0x3]  ;;  %v177_v2 = vld [vmem:[%s1137_s1 + $0x88] sm:$0xff]  ;;  %vm869_vm1 = vmpackc.low %vm59_vm0, %vm59_vm0  ;;  %735 = vset.pattern.permute.xlu0 %v806_v7  ;;  %736 = vset.pattern.permute.xlu1 %v806_v7 }
   0x2   :  { %v176_v1 = vld [vmem:[%s1137_s1 + $0x80] sm:$0xff]  ;;  %657 = vmatprep.subr.msk.mxu0 %vm59_vm0, %v34_v0  ;;  %v161_v8 = vld [vmem:[%s1137_s1 + $0x8] sm:$0xff]  ;;  %v178_v10 = vld [vmem:[%s1137_s1 + $0x90] sm:$0xff] }
   0x3   :  { %v665_v4 = vpack.c.bf16 %v177_v2, %v176_v1  ;;  %v30_v5 = vld [vmem:[%s1138_s2] sm:$0xff]  ;;  %658 = vmatpush3.xpose.msk.msra.mxu0 %vm59_vm0, %v34_v0  ;;  %v31_v9 = vld [vmem:[%s1138_s2 + $0x8] sm:$0xff]  ;;  %v179_v12 = vld [vmem:[%s1137_s1 + $0x98] sm:$0xff] }
   0x4   :  { %v160_v6 = vld [vmem:[%s1137_s1] sm:$0xff]  ;;  %659 = vmatprep.mubr.msk.f32.mxu0 %vm59_vm0, %v30_v5  ;;  %v671_v13 = vpack.c.bf16 %v179_v12, %v178_v10  ;;  %v32_v14 = vld [vmem:[%s1138_s2 + $0x10] sm:$0xff]  ;;  %v163_v16 = vld [vmem:[%s1137_s1 + $0x18] sm:$0xff] }
   0x5   :  { %713 = vmatprep.subr.msk.bf16.mxu1 %vm869_vm1, %v665_v4  ;;  %v668_v11 = vpack.c.bf16 %v161_v8, %v160_v6  ;;  %667 = vmatprep.subr.msk.bf16.mxu0 %vm869_vm1, %v665_v4  ;;  %v162_v15 = vld [vmem:[%s1137_s1 + $0x10] sm:$0xff]  ;;  %v33_v17 = vld [vmem:[%s1138_s2 + $0x18] sm:$0xff]  ;;  %v180_v18 = vld [vmem:[%s1137_s1 + $0xa0] sm:$0xff] }
   0x6   :  { %660 = vmatmul.mubr.msk.f32.vlgmr.msra.gmra.mrb[0].mxu0 %vm59_vm0, %v31_v9  ;;  %v181_v19 = vld [vmem:[%s1137_s1 + $0xa8] sm:$0xff]  ;;  %v674_v20 = vpack.c.bf16 %v163_v16, %v162_v15  ;;  %v940_v23 = vld [vmem:[%s1140_s4] sm:$0xff]  ;;  %v182_v27 = vld [vmem:[%s1137_s1 + $0xb0] sm:$0xff] }
   0x7   :  { %721 = vmatpush3.bf16.xpose.msk.msra.mxu1 %vm869_vm1, %v668_v11  ;;  %670 = vmatpush3.bf16.xpose.msk.msra.mxu0 %vm869_vm1, %v668_v11  ;;  %v677_v21 = vpack.c.bf16 %v181_v19, %v180_v18  ;;  %v931_v22 = vld [vmem:[%s1140_s4 + $0x8] sm:$0xff]  ;;  %v164_v24 = vld [vmem:[%s1137_s1 + $0x20] sm:$0xff]  ;;  %v183_v28 = vld [vmem:[%s1137_s1 + $0xb8] sm:$0xff] }
   0x8   :  { %714 = vmatprep.subr.msk.bf16.mxu1 %vm869_vm1, %v671_v13  ;;  %662 = vmatprep.mubr.msk.f32.mxu0 %vm59_vm0, %v32_v14  ;;  %v165_v25 = vld [vmem:[%s1137_s1 + $0x28] sm:$0xff]  ;;  %v35_v26 = vld [vmem:[%s1139_s3] sm:$0xff]  ;;  %v37_v29 = vld [vmem:[%s1139_s3 + $0x10] sm:$0xff] }
   0x9   :  { %673 = vmatprep.subr.msk.bf16.mxu0 %vm869_vm1, %v671_v13  ;;  %651 = vmatprep.mubr.msk.f32.mxu1 %vm59_vm0, %v931_v22 }
   0xa   :  { %663 = vmatmul.mubr.msk.f32.gmra.mrb[2].mxu0 %vm59_vm0, %v33_v17  ;;  %41 = vperm.xlu0 %735, %v35_v26  }
   0xb   :  { %649 = vmatprep.mubr.msk.f32.mxu0 %vm59_vm0, %v940_v23  ;;  %51 = vperm.xlu1 %736, %v37_v29  }
   0xf   :  { %722 = vmatpush3.bf16.xpose.msk.msra.mxu1 %vm869_vm1, %v674_v20  ;;  %676 = vmatpush3.bf16.xpose.msk.msra.mxu0 %vm869_vm1, %v674_v20 }
  0x10   :  { %715 = vmatprep.subr.msk.bf16.mxu1 %vm869_vm1, %v677_v21  ;;  %679 = vmatprep.subr.msk.bf16.mxu0 %vm869_vm1, %v677_v21 }
  0x11   :  { %15 = vsyncpa [#allocation5], 0  ;;  %v680_v30 = vpack.c.bf16 %v165_v25, %v164_v24  ;;  %v36_v31 = vld [vmem:[%s1139_s3 + $0x8] sm:$0xff]  ;;  %v38_v32 = vld [vmem:[%s1139_s3 + $0x18] sm:$0xff]  ;;  %v683_v33 = vpack.c.bf16 %v183_v28, %v182_v27  ;;  %v807_v13 = vmov 1  }
  0x12   :  { %46 = vperm.xlu0 %735, %v36_v31   ;;  %56 = vperm.xlu1 %736, %v38_v32   ;;  %v196_v34 = vld [vmem:[%s1141_s5] sm:$0xff]  ;;  %v197_v35 = vld [vmem:[%s1141_s5 + $0x8] sm:$0xff]  ;;  %v166_v36 = vld [vmem:[%s1137_s1 + $0x30] sm:$0xff] }
  0x13   :  { %v167_v37 = vld [vmem:[%s1137_s1 + $0x38] sm:$0xff]  ;;  %v184_v38 = vld [vmem:[%s1137_s1 + $0xc0] sm:$0xff]  ;;  %v185_v39 = vld [vmem:[%s1137_s1 + $0xc8] sm:$0xff] }
  0x14   :  { %v686_v40 = vpack.c.bf16 %v167_v37, %v166_v36  ;;  %v198_v41 = vld [vmem:[%s1141_s5 + $0x10] sm:$0xff]  ;;  %v199_v42 = vld [vmem:[%s1141_s5 + $0x18] sm:$0xff]  ;;  %v689_v43 = vpack.c.bf16 %v185_v39, %v184_v38  ;;  %v168_v44 = vld [vmem:[%s1137_s1 + $0x40] sm:$0xff] }
  0x15   :  { %v169_v45 = vld [vmem:[%s1137_s1 + $0x48] sm:$0xff]  ;;  %v186_v46 = vld [vmem:[%s1137_s1 + $0xd0] sm:$0xff]  ;;  %v187_v47 = vld [vmem:[%s1137_s1 + $0xd8] sm:$0xff] }
  0x16   :  { %202 = vperm.xlu0 %735, %v196_v34   ;;  %207 = vperm.xlu1 %736, %v197_v35   ;;  %v692_v48 = vpack.c.bf16 %v169_v45, %v168_v44  ;;  %v695_v49 = vpack.c.bf16 %v187_v47, %v186_v46  ;;  %v170_v50 = vld [vmem:[%s1137_s1 + $0x50] sm:$0xff]  ;;  %v171_v51 = vld [vmem:[%s1137_s1 + $0x58] sm:$0xff]  ;;  %v188_v52 = vld [vmem:[%s1137_s1 + $0xe0] sm:$0xff] }
  0x17   :  { %723 = vmatpush3.bf16.xpose.msk.msra.mxu1 %vm869_vm1, %v680_v30  ;;  %682 = vmatpush3.bf16.xpose.msk.msra.mxu0 %vm869_vm1, %v680_v30  ;;  %v189_v53 = vld [vmem:[%s1137_s1 + $0xe8] sm:$0xff]  ;;  %v698_v54 = vpack.c.bf16 %v171_v51, %v170_v50  ;;  %v172_v56 = vld [vmem:[%s1137_s1 + $0x60] sm:$0xff]  ;;  %v190_v58 = vld [vmem:[%s1137_s1 + $0xf0] sm:$0xff] }
  0x18   :  { %716 = vmatprep.subr.msk.bf16.mxu1 %vm869_vm1, %v683_v33  ;;  %685 = vmatprep.subr.msk.bf16.mxu0 %vm869_vm1, %v683_v33  ;;  %v701_v55 = vpack.c.bf16 %v189_v53, %v188_v52  ;;  %v173_v57 = vld [vmem:[%s1137_s1 + $0x68] sm:$0xff]  ;;  %v191_v59 = vld [vmem:[%s1137_s1 + $0xf8] sm:$0xff]  ;;  %v174_v62 = vld [vmem:[%s1137_s1 + $0x70] sm:$0xff] }
  0x19   :  { %v704_v60 = vpack.c.bf16 %v173_v57, %v172_v56  ;;  %v707_v61 = vpack.c.bf16 %v191_v59, %v190_v58  ;;  %v175_v63 = vld [vmem:[%s1137_s1 + $0x78] sm:$0xff]  ;;  %v194_v1 = vld [vmem:[%s1140_s4 + $0x10] sm:$0xff]  ;;  %v418_v17 = vld [vmem:[%s1142_s6 + $0x8] sm:$0xff] }
  0x1a   :  { %212 = vperm.xlu0 %735, %v198_v41   ;;  %217 = vperm.xlu1 %736, %v199_v42   ;;  %v710_v0 = vpack.c.bf16 %v175_v63, %v174_v62  ;;  %v195_v2 = vld [vmem:[%s1140_s4 + $0x18] sm:$0xff]  ;;  %v417_v18 = vld [vmem:[%s1142_s6] sm:$0xff]  ;;  %v419_v19 = vld [vmem:[%s1142_s6 + $0x10] sm:$0xff] }
  0x1b   :  { %v420_v20 = vld [vmem:[%s1142_s6 + $0x18] sm:$0xff]  ;;  %s808_s6 = smov [#allocation2]  }
  0x1c   :  { %s546_s10 = sshll.u32 %s808_s6, 4  ;;  %s547_s10 = int_to_ptr.vmem [resolvable:$true] %s546_s10 }
  0x1d   :  { %s758_s11 = scalar_lea.vmem %s547_s10, 1024  ;;  %p763_p1 = scmp.lt.s32.totalorder %s547_s10, %s547_s10 }
  0x1e   :  { %p759_p0 = scmp.ne.s32.totalorder %s547_s10, %s758_s11  ;;  %p764_p2 = scmp.lt.s32.totalorder %s758_s11, %s758_s11 }
  0x1f   :  { %724 = vmatpush3.bf16.xpose.msk.msra.mxu1 %vm869_vm1, %v686_v40  ;;  %688 = vmatpush3.bf16.xpose.msk.msra.mxu0 %vm869_vm1, %v686_v40 }
  0x20   :  { %717 = vmatprep.subr.msk.bf16.mxu1 %vm869_vm1, %v689_v43  ;;  %691 = vmatprep.subr.msk.bf16.mxu0 %vm869_vm1, %v689_v43  ;;  %p765_p3 = por %p764_p2, %p763_p1 }
  0x22   :  { %p766_p4 = pnand %p765_p3, %p759_p0 }
  0x27   :  { %725 = vmatpush3.bf16.xpose.msk.msra.mxu1 %vm869_vm1, %v692_v48  ;;  %694 = vmatpush3.bf16.xpose.msk.msra.mxu0 %vm869_vm1, %v692_v48 }
  0x28   :  { %718 = vmatprep.subr.msk.bf16.mxu1 %vm869_vm1, %v695_v49  ;;  %697 = vmatprep.subr.msk.bf16.mxu0 %vm869_vm1, %v695_v49 }
  0x2f   :  { %726 = vmatpush3.bf16.xpose.msk.msra.mxu1 %vm869_vm1, %v698_v54  ;;  %700 = vmatpush3.bf16.xpose.msk.msra.mxu0 %vm869_vm1, %v698_v54 }
  0x30   :  { %719 = vmatprep.subr.msk.bf16.mxu1 %vm869_vm1, %v701_v55  ;;  %703 = vmatprep.subr.msk.bf16.mxu0 %vm869_vm1, %v701_v55 }
  0x37   :  { %727 = vmatpush3.bf16.xpose.msk.msra.mxu1 %vm869_vm1, %v704_v60  ;;  %706 = vmatpush3.bf16.xpose.msk.msra.mxu0 %vm869_vm1, %v704_v60 }
  0x38   :  { %720 = vmatprep.subr.msk.bf16.mxu1 %vm869_vm1, %v707_v61  ;;  %709 = vmatprep.subr.msk.bf16.mxu0 %vm869_vm1, %v707_v61 }
  0x3f   :  { %728 = vmatpush3.bf16.xpose.msk.msra.mxu1 %vm869_vm1, %v710_v0  ;;  %712 = vmatpush3.bf16.xpose.msk.msra.mxu0 %vm869_vm1, %v710_v0 }
  0x46   :  { %652 = vmatmul.mubr.msk.f32.vlgmr.msra.gmra.mrb[0].mxu1 %vm59_vm0, %v931_v22  ;;  %650 = vmatmul.mubr.msk.f32.vlgmr.msra.gmra.mrb[4].mxu0 %vm59_vm0, %v940_v23 }
  0x47   :  { %653 = vmatprep.mubr.msk.f32.mxu1 %vm59_vm0, %v194_v1 }
  0x4a   :  { %654 = vmatmul.mubr.msk.f32.gmra.mrb[2].mxu1 %vm59_vm0, %v194_v1 }
  0x4b   :  { %655 = vmatprep.mubr.msk.f32.mxu1 %vm59_vm0, %v195_v2 }
  0x4e   :  { %656 = vmatmul.mubr.msk.f32.gmra.mrb[4].mxu1 %vm59_vm0, %v195_v2 }
  0x89   :  { %v42_v3 = vpop.permute.xlu0 %41 }
  0x8a   :  { %v52_v12 = vpop.permute.xlu1 %51 }
  0x91   :  { %v47_v4 = vpop.permute.xlu0 %46  ;;  %v57_v15 = vpop.permute.xlu1 %56 }
  0x95   :  { %v203_v21 = vpop.permute.xlu0 %202  ;;  %v208_v22 = vpop.permute.xlu1 %207 }
  0x99   :  { %v213_v30 = vpop.permute.xlu0 %212  ;;  %v218_v35 = vpop.permute.xlu1 %217 }
  0xd9   :  { %v661_v5 = vpop.f32.mrb[0].mxu0 }
  0xda   :  { %v147_v6 = vadd.f32 %v661_v5, %v47_v4  ;;  %v141_v8 = vpop.f32.mrb[1].mxu0 }
  0xdb   :  { %v142_v9 = vadd.f32 %v141_v8, %v42_v3 }
  0xdc   :  { %434 = vperm.xlu0 %735, %v147_v6  }
  0xdd   :  { %429 = vperm.xlu1 %736, %v142_v9   ;;  %v664_v10 = vpop.f32.mrb[2].mxu0 }
  0xde   :  { %v151_v11 = vpop.f32.mrb[3].mxu0  ;;  %v157_v16 = vadd.f32 %v664_v10, %v57_v15 }
  0xdf   :  { %v152_v14 = vadd.f32 %v151_v11, %v52_v12 }
  0xe0   :  { %737 = vset.pattern.permute.xlu0 %v807_v13 }
  0xe1   :  { %503 = vperm.xlu0 %737, %v147_v6   ;;  %738 = vset.pattern.permute.xlu1 %v807_v13 }
  0xe2   :  { %499 = vperm.xlu1 %738, %v142_v9  }
  0xe5   :  { %507 = vperm.xlu0 %737, %v152_v14  }
  0xe6   :  { %739 = vset.pattern.permute.xlu1 %v806_v7 }
  0xe7   :  { %439 = vperm.xlu1 %739, %v152_v14  }
  0xe9   :  { %511 = vperm.xlu0 %737, %v157_v16  }
  0xeb   :  { %444 = vperm.xlu1 %739, %v157_v16  }
  0xed   :  { %740 = vset.pattern.permute.xlu0 %v806_v7 }
  0xee   :  { %462 = vperm.xlu0 %740, %v418_v17  }
  0xef   :  { %457 = vperm.xlu1 %739, %v417_v18  }
  0xf2   :  { %741 = vset.pattern.permute.xlu0 %v807_v13 }
  0xf3   :  { %467 = vperm.xlu1 %739, %v419_v19  }
  0xf7   :  { %472 = vperm.xlu1 %739, %v420_v20  }
 0x119   :  { %v400_v23 = vpop.f32.mrb[0].mxu1  ;;  %v394_v26 = vpop.f32.mrb[4].mxu0 }
 0x11a   :  { %v401_v24 = vadd.f32 %v400_v23, %v208_v22  ;;  %v402_v25 = vpop.f32.mrb[1].mxu1  ;;  %v395_v27 = vadd.f32 %v394_v26, %v203_v21  ;;  %v396_v28 = vpop.f32.mrb[5].mxu0 }
 0x11b   :  { %v403_v7 = vadd.f32 %v402_v25, %v208_v22  ;;  %v397_v29 = vadd.f32 %v396_v28, %v203_v21 }
 0x11c   :  { %424 = vst [vmem:[#allocation2 + $0x8] sm:$0xff] %v401_v24  ;;  %423 = vst [vmem:[#allocation2] sm:$0xff] %v395_v27 }
 0x11d   :  { %495 = vst [vmem:[#allocation2 + $0x28] sm:$0xff] %v403_v7  ;;  %v406_v31 = vpop.f32.mrb[2].mxu1  ;;  %494 = vst [vmem:[#allocation2 + $0x20] sm:$0xff] %v397_v29 }
 0x11e   :  { %v407_v32 = vadd.f32 %v406_v31, %v213_v30  ;;  %v408_v33 = vpop.f32.mrb[3].mxu1 }
 0x11f   :  { %v409_v34 = vadd.f32 %v408_v33, %v213_v30 }
 0x120   :  { %425 = vst [vmem:[#allocation2 + $0x10] sm:$0xff] %v407_v32 }
 0x121   :  { %496 = vst [vmem:[#allocation2 + $0x30] sm:$0xff] %v409_v34  ;;  %v412_v36 = vpop.f32.mrb[4].mxu1 }
 0x122   :  { %v413_v37 = vadd.f32 %v412_v36, %v218_v35  ;;  %v414_v38 = vpop.f32.mrb[5].mxu1 }
 0x123   :  { %v415_v39 = vadd.f32 %v414_v38, %v218_v35 }
 0x124   :  { %426 = vst [vmem:[#allocation2 + $0x18] sm:$0xff] %v413_v37 }
 0x125   :  { %497 = vst [vmem:[#allocation2 + $0x38] sm:$0xff] %v415_v39 }
 0x126   :  { %769 = shalt.err (!%p766_p4)
}
 0x127   :  { %s770_s12 = scalar_lea.hbm %s1143_s7, 1024 }
 0x128   :  { %p771_p5 = scmp.ne.s32.totalorder %s1143_s7, %s770_s12  ;;  %p774_p6 = scmp.lt.u32.totalorder %s770_s12, %s1143_s7 }
 0x12a   :  { %p776_p7 = pnand %p774_p6, %p771_p5 }
 0x12c   :  { %779 = shalt.err (!%p776_p7)
}
 0x12d   :  { %s809_s16 = smov 128   ;;  %s810_s17 = smov 8   ;;  %v421_v21 = vlaneseq }
 0x12e   :  { %552 = dma.vmem_to_hbm [thread:$0]  %s547_s10, 1024, %s1143_s7, [#allocation3], %s809_s16, %s809_s16, %s810_s17  }
 0x12f   :  { %v422_v26 = vshrl.u32 %v421_v21, 7  ;;  %s811_s7 = smov [#allocation4]  }
 0x130   :  { %s559_s20 = sshll.u32 %s811_s7, 4  ;;  %s560_s20 = int_to_ptr.vmem [resolvable:$true] %s559_s20 }
 0x131   :  { %vm535_vm2 = vcmp.eq.s32.totalorder %v422_v26, 1  ;;  %vm488_vm3 = vcmp.eq.s32.totalorder %v422_v26, 0  ;;  %s780_s21 = scalar_lea.vmem %s560_s20, 32  ;;  %p785_p9 = scmp.lt.s32.totalorder %s560_s20, %s560_s20 }
 0x132   :  { %p781_p8 = scmp.ne.s32.totalorder %s560_s20, %s780_s21  ;;  %p786_p10 = scmp.lt.s32.totalorder %s780_s21, %s780_s21 }
 0x134   :  { %p787_p11 = por %p786_p10, %p785_p9 }
 0x136   :  { %p788_p12 = pnand %p787_p11, %p781_p8 }
 0x15b   :  { %v435_v40 = vpop.permute.xlu0 %434 }
 0x15c   :  { %v430_v41 = vpop.permute.xlu1 %429  ;;  %v448_v43 = vadd.f32 %v435_v40, %v401_v24 }
 0x15d   :  { %v447_v46 = vadd.f32 %v430_v41, %v395_v27 }
 0x160   :  { %v504_v42 = vpop.permute.xlu0 %503 }
 0x161   :  { %v515_v44 = vadd.f32 %v504_v42, %v403_v7  ;;  %v500_v45 = vpop.permute.xlu1 %499 }
 0x162   :  { %v514_v47 = vadd.f32 %v500_v45, %v397_v29 }
 0x163   :  { %742 = vtanh.f32 %v515_v44 }
 0x164   :  { %744 = vtanh.f32 %v514_v47  ;;  %v508_v48 = vpop.permute.xlu0 %507 }
 0x165   :  { %746 = vtanh.f32 %v448_v43  ;;  %v516_v49 = vadd.f32 %v508_v48, %v409_v34 }
 0x166   :  { %748 = vtanh.f32 %v447_v46  ;;  %v440_v50 = vpop.permute.xlu1 %439 }
 0x167   :  { %750 = vtanh.f32 %v516_v49  ;;  %v449_v51 = vadd.f32 %v440_v50, %v407_v32 }
 0x168   :  { %v512_v52 = vpop.permute.xlu0 %511 }
 0x169   :  { %752 = vtanh.f32 %v449_v51  ;;  %v517_v53 = vadd.f32 %v512_v52, %v415_v39 }
 0x16a   :  { %v445_v54 = vpop.permute.xlu1 %444 }
 0x16b   :  { %754 = vtanh.f32 %v517_v53  ;;  %v450_v55 = vadd.f32 %v445_v54, %v413_v37 }
 0x16d   :  { %v743_v56 = vpop.eup %742  ;;  %756 = vtanh.f32 %v450_v55  ;;  %v463_v58 = vpop.permute.xlu0 %462 }
 0x16e   :  { %v745_v57 = vpop.eup %744  ;;  %v458_v59 = vpop.permute.xlu1 %457  ;;  %v523_v63 = vmul.f32 %v743_v56, %v463_v58 }
 0x16f   :  { %v747_v60 = vpop.eup %746  ;;  %v522_v0 = vmul.f32 %v745_v57, %v458_v59 }
 0x170   :  { %v749_v61 = vpop.eup %748  ;;  %v476_v1 = vmul.f32 %v747_v60, %v463_v58 }
 0x171   :  { %v751_v62 = vpop.eup %750  ;;  %v475_v2 = vmul.f32 %v749_v61, %v458_v59  ;;  %v526_v9 = vadd.f32 %v523_v63, %v522_v0 }
 0x172   :  { %v468_v3 = vpop.permute.xlu1 %467 }
 0x173   :  { %v753_v4 = vpop.eup %752  ;;  %v524_v5 = vmul.f32 %v751_v62, %v468_v3  ;;  %v479_v10 = vadd.f32 %v476_v1, %v475_v2 }
 0x174   :  { %v477_v6 = vmul.f32 %v753_v4, %v468_v3 }
 0x175   :  { %v755_v8 = vpop.eup %754  ;;  %v527_v13 = vadd.f32 %v526_v9, %v524_v5 }
 0x176   :  { %v473_v11 = vpop.permute.xlu1 %472  ;;  %v480_v15 = vadd.f32 %v479_v10, %v477_v6 }
 0x177   :  { %v757_v12 = vpop.eup %756  ;;  %v525_v14 = vmul.f32 %v755_v8, %v473_v11 }
 0x178   :  { %v478_v16 = vmul.f32 %v757_v12, %v473_v11 }
 0x179   :  { %v528_v17 = vadd.f32 %v527_v13, %v525_v14 }
 0x17a   :  { %v481_v18 = vadd.f32 %v480_v15, %v478_v16 }
 0x17b   :  { %v529_v19 = vrot.slane %v528_v17, 4 }
 0x17c   :  { %v482_v20 = vrot.slane %v481_v18, 4 }
 0x17d   :  { %v530_v22 = vadd.f32 %v529_v19, %v528_v17 }
 0x17e   :  { %v483_v23 = vadd.f32 %v482_v20, %v481_v18 }
 0x17f   :  { %v531_v24 = vrot.slane %v530_v22, 2 }
 0x180   :  { %v484_v25 = vrot.slane %v483_v23, 2 }
 0x181   :  { %v532_v7 = vadd.f32 %v531_v24, %v530_v22 }
 0x182   :  { %v485_v27 = vadd.f32 %v484_v25, %v483_v23 }
 0x183   :  { %v533_v28 = vrot.slane %v532_v7, 1 }
 0x184   :  { %v486_v29 = vrot.slane %v485_v27, 1 }
 0x185   :  { %v534_v30 = vadd.f32 %v533_v28, %v532_v7 }
 0x186   :  { %v487_v31 = vadd.f32 %v486_v29, %v485_v27 }
 0x187   :  { %v538_v32 = vsel %vm535_vm2, %v534_v30, 0.0 }
 0x188   :  { %v491_v33 = vsel %vm488_vm3, %v487_v31, 0.0 }
 0x189   :  { %v539_v34 = vadd.f32 %v538_v32, %v491_v33 }
 0x18b   :  { %540 = vst [vmem:[#allocation4] sm:$0x3] %v539_v34 }
 0x18c   :  { %791 = shalt.err (!%p788_p12)
}
 0x18d   :  { %s792_s24 = scalar_lea.hbm %s1144_s8, 32 }
 0x18e   :  { %p793_p13 = scmp.ne.s32.totalorder %s1144_s8, %s792_s24  ;;  %p796_p0 = scmp.lt.u32.totalorder %s792_s24, %s1144_s8 }
 0x190   :  { %p798_p1 = pnand %p796_p0, %p793_p13 }
 0x192   :  { %801 = shalt.err (!%p798_p1)
}
 0x193   :  { %562 = dma.vmem_to_hbm [thread:$0]  %s560_s20, 32, %s1144_s8, [#allocation5]  }
 0x194   :  { %802 = dma.done.wait [#allocation3], 1024  }
 0x195   :  { %803 = vsyncadd [#allocation3], 4294966272 }
 0x196   :  { %804 = dma.done.wait [#allocation5], 32  }
 0x197   :  { %805 = vsyncadd [#allocation5], 4294967264 }
 0x198   :  { %569 = vsyncpa [#allocation3], 1 }
 0x199   :  { %570 = vsyncpa [#allocation5], 1 }

</bundles_post_ra>
